<compile_context>
chip_gen: v7x
topology: tpu7x:2x2x1
jax: 0.10.0
libtpu: 0.0.40
codegen_flags: <defaults>
</compile_context>

<pallas_src>
import jax
import jax.numpy as jnp
from jax.experimental import pallas as pl
from jax.experimental.pallas import tpu as pltpu

_LANES = 128


def _make_kernel(tn, emit_yhat):
    n_chunks = tn // _LANES

    def kernel(scal_ref,              # scalar-prefetch: [0.5/sigma^2, const]
               w_ref, f_ref, y_ref,   # inputs (VMEM tiles)
               *out_refs):            # (yhat?, logp_partials)
        if emit_yhat:
            yhat_ref, logp_ref = out_refs
        else:
            (logp_ref,) = out_refs

        # Single full-K MXU matmul for this (time-tile, voxel-tile).
        mu = jnp.dot(w_ref[...], f_ref[...], preferred_element_type=jnp.float32)
        if emit_yhat:
            yhat_ref[...] = mu.astype(yhat_ref.dtype)

        a = scal_ref[0]       # 0.5 / sigma**2
        const = scal_ref[1]   # -log(sigma) - 0.5*log(2*pi)
        d = y_ref[...].astype(jnp.float32) - mu
        lp = const - a * (d * d)

        # Lane-dense partial reduction: (tm, tn) -> (tm, 128) via plain VPU
        # adds of 128-wide static chunks (no XLU reduce, no masked narrow
        # stores in the hot loop).
        part = lp[:, 0:_LANES]
        for c in range(1, n_chunks):
            part = part + lp[:, c * _LANES:(c + 1) * _LANES]
        logp_ref[0] = part

    return kernel


def _pick_tile(dim, preferred, quantum):
    """Largest tile <= preferred that divides dim (multiple of quantum)."""
    if dim <= preferred:
        return dim
    t = (preferred // quantum) * quantum
    while t >= quantum:
        if dim % t == 0:
            return t
        t -= quantum
    return dim  # fall back: single tile over the whole axis


def generative_likelihood(weights, factors, observations, sigma, *,
                          block_t=128, block_v=1024, return_predictions=True):
    """Returns (Y_hat = weights @ factors, total Normal(Y | Y_hat, sigma) log-prob).

    If return_predictions=False, Y_hat is not written back to HBM (returns None).
    """
    T, K = weights.shape
    K2, V = factors.shape
    assert K == K2 and observations.shape == (T, V)
    # TODO(synk): real HTFA voxel counts may not be lane multiples; pad V to 128.
    assert V % _LANES == 0, "voxel axis must be a multiple of 128"

    tm = _pick_tile(T, block_t, 8)
    tn = _pick_tile(V, block_v, _LANES)
    assert T % tm == 0 and V % tn == 0 and tn % _LANES == 0

    sigma = jnp.asarray(sigma, jnp.float32)
    scal = jnp.stack([0.5 / (sigma * sigma),
                      -(jnp.log(sigma) + 0.5 * jnp.log(2.0 * jnp.pi))]
                     ).astype(jnp.float32)          # shape (2,), lives in SMEM

    grid = (T // tm, V // tn)
    n_j = V // tn

    out_shapes, out_specs = [], []
    if return_predictions:
        out_shapes.append(jax.ShapeDtypeStruct((T, V), jnp.float32))
        out_specs.append(pl.BlockSpec((tm, tn), lambda i, j, s: (i, j)))
    # Lane-dense per-(i,j) partial log-prob sums: (n_j, T, 128).
    out_shapes.append(jax.ShapeDtypeStruct((n_j, T, _LANES), jnp.float32))
    out_specs.append(pl.BlockSpec((1, tm, _LANES), lambda i, j, s: (j, i, 0)))

    in_specs = [
        pl.BlockSpec((tm, K), lambda i, j, s: (i, 0)),   # weights (full K)
        pl.BlockSpec((K, tn), lambda i, j, s: (0, j)),   # factors (full K)
        pl.BlockSpec((tm, tn), lambda i, j, s: (i, j)),  # observations Y
    ]

    bytes_accessed = 4 * (T * K * n_j + K * V * (T // tm) + T * V
                          + (T * V if return_predictions else 0)
                          + n_j * T * _LANES)
    cost = pl.CostEstimate(flops=int(2 * T * V * K + 4 * T * V),
                           transcendentals=0,
                           bytes_accessed=int(bytes_accessed))

    # Double-buffered inputs/outputs + margin; keep an explicit scoped limit.
    vmem_bytes = 4 * 2 * (tm * K + K * tn + tm * tn
                          + (tm * tn if return_predictions else 0)
                          + tm * _LANES) + (4 << 20)
    vmem_bytes = int(max(vmem_bytes, 32 * 1024 * 1024))

    outs = pl.pallas_call(
        _make_kernel(tn, return_predictions),
        out_shape=tuple(out_shapes),
        grid_spec=pltpu.PrefetchScalarGridSpec(
            num_scalar_prefetch=1,
            grid=grid,
            in_specs=in_specs,
            out_specs=out_specs,
        ),
        compiler_params=pltpu.CompilerParams(
            dimension_semantics=("parallel", "parallel"),
            vmem_limit_bytes=vmem_bytes),
        cost_estimate=cost,
    )(scal, weights, factors, observations)

    if return_predictions:
        yhat, logp_parts = outs
    else:
        (logp_parts,) = outs
        yhat = None
    logp = jnp.sum(logp_parts)
    return yhat, logp


if __name__ == "__main__":
    key = jax.random.PRNGKey(0)
    kw, kf, ky = jax.random.split(key, 3)

    # Small HTFA-like shapes: T time points, K factors, V voxels.
    T, K, V = 16, 16, 512
    weights = jax.random.normal(kw, (T, K), jnp.float32)          # trace sample stand-in
    factors = jax.random.normal(kf, (K, V), jnp.float32)          # trace sample stand-in
    observations = jax.random.normal(ky, (T, V), jnp.float32)     # observed activations Y
    # Deterministic noise-scale parameter init: log_sigma = 0 -> sigma = softplus(0).
    sigma = jax.nn.softplus(jnp.float32(0.0))

    yhat, logp = generative_likelihood(weights, factors, observations, sigma)
    jax.block_until_ready((yhat, logp))

    # logp-only path (no Y_hat HBM writeback).
    _, logp_only = generative_likelihood(weights, factors, observations, sigma,
                                         return_predictions=False)
    jax.block_until_ready(logp_only)

    # Pure-JAX reference for correctness.
    yhat_ref = weights @ factors
    z = (observations - yhat_ref) / sigma
    logp_ref = jnp.sum(-0.5 * z * z - jnp.log(sigma) - 0.5 * jnp.log(2.0 * jnp.pi))

    assert jnp.allclose(yhat, yhat_ref, rtol=1e-4, atol=1e-4)
    assert jnp.allclose(logp, logp_ref, rtol=1e-4, atol=1e-2)
    assert jnp.allclose(logp_only, logp_ref, rtol=1e-4, atol=1e-2)

    print("KERNEL_OK")
</pallas_src>

<mosaic_0001>
module attributes {stable_mosaic.version = 11 : i64} {
  func.func @kernel(%arg0: i32, %arg1: i32, %arg2: memref<2xf32, #tpu.memory_space<smem>>, %arg3: memref<16x16xf32, #tpu.memory_space<vmem>>, %arg4: memref<16x512xf32, #tpu.memory_space<vmem>>, %arg5: memref<16x512xf32, #tpu.memory_space<vmem>>, %arg6: memref<16x512xf32, #tpu.memory_space<vmem>>, %arg7: memref<1x16x128xf32, #tpu.memory_space<vmem>>) attributes {dimension_semantics = [#tpu.dimension_semantics<parallel>, #tpu.dimension_semantics<parallel>], iteration_bounds = array<i64: 1, 1>, scalar_prefetch = 1 : i64, scratch_operands = 0 : i64, tpu.core_type = #tpu.core_type<tc>, window_params = [{transform_indices = @transform_0, window_bounds = array<i64: 16, 16>}, {transform_indices = @transform_1, window_bounds = array<i64: 16, 512>}, {transform_indices = @transform_2, window_bounds = array<i64: 16, 512>}, {transform_indices = @transform_3, window_bounds = array<i64: 16, 512>}, {transform_indices = @transform_4, window_bounds = array<i64: 1, 16, 128>}]} {
    %c0 = arith.constant 0 : index
    %c0_0 = arith.constant 0 : index
    %0 = vector.load %arg3[%c0, %c0_0] : memref<16x16xf32, #tpu.memory_space<vmem>>, vector<16x16xf32>
    %c0_1 = arith.constant 0 : index
    %c0_2 = arith.constant 0 : index
    %1 = vector.load %arg4[%c0_1, %c0_2] : memref<16x512xf32, #tpu.memory_space<vmem>>, vector<16x512xf32>
    %cst = arith.constant dense<0.000000e+00> : vector<16x512xf32>
    %2 = tpu.matmul %0, %1, %cst {dimension_numbers = #tpu.dot_dimension_numbers<[1], [0], [0], [1], [0, 0, 1, 1], [], []>} : vector<16x16xf32>, vector<16x512xf32>, vector<16x512xf32> -> vector<16x512xf32>
    %c0_3 = arith.constant 0 : index
    %c0_4 = arith.constant 0 : index
    %3 = vector.load %arg6[%c0_3, %c0_4] : memref<16x512xf32, #tpu.memory_space<vmem>>, vector<16x512xf32>
    tpu.vector_store %arg6[%c0_3, %c0_4], %2 {strides = array<i32>} : memref<16x512xf32, #tpu.memory_space<vmem>>, vector<16x512xf32>,
    %c0_5 = arith.constant 0 : index
    %4 = memref.load %arg2[%c0_5] : memref<2xf32, #tpu.memory_space<smem>>
    %c1 = arith.constant 1 : index
    %5 = memref.load %arg2[%c1] : memref<2xf32, #tpu.memory_space<smem>>
    %c0_6 = arith.constant 0 : index
    %c0_7 = arith.constant 0 : index
    %6 = vector.load %arg5[%c0_6, %c0_7] : memref<16x512xf32, #tpu.memory_space<vmem>>, vector<16x512xf32>
    %7 = arith.subf %6, %2 : vector<16x512xf32>
    %8 = arith.mulf %7, %7 : vector<16x512xf32>
    %9 = vector.broadcast %4 : f32 to vector<16x512xf32>
    %10 = arith.mulf %9, %8 : vector<16x512xf32>
    %11 = vector.broadcast %5 : f32 to vector<16x512xf32>
    %12 = arith.subf %11, %10 : vector<16x512xf32>
    %13 = vector.extract_strided_slice %12 {offsets = [0, 0], sizes = [16, 128], strides = [1, 1]} : vector<16x512xf32> to vector<16x128xf32>
    %14 = vector.extract_strided_slice %12 {offsets = [0, 128], sizes = [16, 128], strides = [1, 1]} : vector<16x512xf32> to vector<16x128xf32>
    %15 = arith.addf %13, %14 : vector<16x128xf32>
    %16 = vector.extract_strided_slice %12 {offsets = [0, 256], sizes = [16, 128], strides = [1, 1]} : vector<16x512xf32> to vector<16x128xf32>
    %17 = arith.addf %15, %16 : vector<16x128xf32>
    %18 = vector.extract_strided_slice %12 {offsets = [0, 384], sizes = [16, 128], strides = [1, 1]} : vector<16x512xf32> to vector<16x128xf32>
    %19 = arith.addf %17, %18 : vector<16x128xf32>
    %c0_8 = arith.constant 0 : index
    %c0_9 = arith.constant 0 : index
    %c0_10 = arith.constant 0 : index
    %20 = vector.load %arg7[%c0_8, %c0_9, %c0_10] : memref<1x16x128xf32, #tpu.memory_space<vmem>>, vector<1x16x128xf32>
    %21 = vector.shape_cast %20 : vector<1x16x128xf32> to vector<16x128xf32>
    %22 = vector.shape_cast %19 : vector<16x128xf32> to vector<1x16x128xf32>
    tpu.vector_store %arg7[%c0_8, %c0_9, %c0_10], %22 {strides = array<i32>} : memref<1x16x128xf32, #tpu.memory_space<vmem>>, vector<1x16x128xf32>,
    return
  }
  func.func @transform_0(%arg0: i32, %arg1: i32, %arg2: memref<2xf32, #tpu.memory_space<smem>>) -> (i32, i32) {
    %c0_i32 = arith.constant 0 : i32
    %c0_i32_0 = arith.constant 0 : i32
    return %arg0, %c0_i32 : i32, i32
  }
  func.func @transform_1(%arg0: i32, %arg1: i32, %arg2: memref<2xf32, #tpu.memory_space<smem>>) -> (i32, i32) {
    %c0_i32 = arith.constant 0 : i32
    %c0_i32_0 = arith.constant 0 : i32
    return %c0_i32, %arg1 : i32, i32
  }
  func.func @transform_2(%arg0: i32, %arg1: i32, %arg2: memref<2xf32, #tpu.memory_space<smem>>) -> (i32, i32) {
    %c0_i32 = arith.constant 0 : i32
    return %arg0, %arg1 : i32, i32
  }
  func.func @transform_3(%arg0: i32, %arg1: i32, %arg2: memref<2xf32, #tpu.memory_space<smem>>) -> (i32, i32) {
    %c0_i32 = arith.constant 0 : i32
    return %arg0, %arg1 : i32, i32
  }
  func.func @transform_4(%arg0: i32, %arg1: i32, %arg2: memref<2xf32, #tpu.memory_space<smem>>) -> (i32, i32, i32) {
    %c0_i32 = arith.constant 0 : i32
    %c0_i32_0 = arith.constant 0 : i32
    return %arg1, %arg0, %c0_i32 : i32, i32, i32
  }
}

</mosaic_0001>

<bundles_post_ra>
// kernel: tpu_custom_call.1
= control target key start
LH: loop header
LB: loop body
LE: loop exit
PB: predicated region body
PF: predicated region fallthrough
CT: control target
= control target key end

     0   :  { %s628_s0 = inlined_call_operand.hbm [shape: f32[2], index: 0, kind: input, shape index: {}]   ;;  %s629_s1 = inlined_call_operand.hbm [shape: f32[16,16], index: 1, kind: input, shape index: {}]   ;;  %s630_s2 = inlined_call_operand.hbm [shape: f32[16,512], index: 2, kind: input, shape index: {}]   ;;  %s631_s3 = inlined_call_operand.hbm [shape: f32[16,512], index: 3, kind: input, shape index: {}]   ;;  %s632_s4 = inlined_call_operand.hbm [shape: f32[16,512], index: 4, kind: output, shape index: {0}]   ;;  %s633_s5 = inlined_call_operand.hbm [shape: f32[1,16,128], index: 5, kind: output, shape index: {1}]  }
   0x1   :  { %s353_s20 = scalar_lea.hbm %s628_s0, 16 }
   0x2   :  { %p354_p0 = scmp.ne.s32.totalorder %s628_s0, %s353_s20  ;;  %p357_p1 = scmp.lt.u32.totalorder %s353_s20, %s628_s0 }
   0x4   :  { %p359_p2 = pnand %p357_p1, %p354_p0 }
   0x6   :  { %362 = shalt.err (!%p359_p2)  }
   0x7   :  { %s483_s25 = smov [#allocation3]  }
   0x8   :  { %12 = dma.hbm_to_smem %s628_s0, 16, %s483_s25, [#allocation2] }
   0x9   :  { %473 = dma.done.wait [#allocation2], 16 }
   0xa   :  { %474 = vsyncadd [#allocation2], 4294967280 }
   0xb   :  { %14 = sfence }
   0xc   :  { %15 = vsyncpa [#allocation5], 0 }
   0xd   :  { %16 = vsyncpa [#allocation8], 0 }
   0xe   :  { %17 = vsyncpa [#allocation6], 0 }
   0xf   :  { %18 = vsyncpa [#allocation12], 0  ;;  %s484_s28 = smov [#allocation7]   ;;  %s363_s7 = scalar_lea.hbm %s630_s2, 1024 }
  0x10   :  { %s36_s29 = sshll.u32 %s484_s28, 4  ;;  %p364_p3 = scmp.ne.s32.totalorder %s630_s2, %s363_s7  ;;  %s37_s29 = int_to_ptr.vmem [resolvable:$true] %s36_s29 }
  0x11   :  { %p367_p4 = scmp.lt.u32.totalorder %s363_s7, %s630_s2 }
  0x13   :  { %p369_p5 = pnand %p367_p4, %p364_p3 }
  0x15   :  { %372 = shalt.err (!%p369_p5)
}
  0x16   :  { %s373_s11 = scalar_lea.vmem %s37_s29, 1024  ;;  %p378_p7 = scmp.lt.s32.totalorder %s37_s29, %s37_s29 }
  0x17   :  { %p374_p6 = scmp.ne.s32.totalorder %s37_s29, %s373_s11  ;;  %p379_p8 = scmp.lt.s32.totalorder %s373_s11, %s373_s11 }
  0x19   :  { %p380_p9 = por %p379_p8, %p378_p7 }
  0x1b   :  { %p381_p10 = pnand %p380_p9, %p374_p6 }
  0x1d   :  { %384 = shalt.err (!%p381_p10)
}
  0x1e   :  { %s485_s12 = smov 512   ;;  %s486_s13 = smov 32  }
  0x1f   :  { %42 = dma.hbm_to_vmem [thread:$0]  %s630_s2, 1024, %s37_s29, [#allocation8], %s485_s12, %s485_s12, %s486_s13  }
  0x20   :  { %s487_s16 = smov [#allocation4]   ;;  %s385_s20 = scalar_lea.hbm %s629_s1, 256 }
  0x21   :  { %s24_s17 = sshll.u32 %s487_s16, 4  ;;  %p386_p11 = scmp.ne.s32.totalorder %s629_s1, %s385_s20  ;;  %s25_s17 = int_to_ptr.vmem [resolvable:$true] %s24_s17 }
  0x22   :  { %p389_p12 = scmp.lt.u32.totalorder %s385_s20, %s629_s1 }
  0x24   :  { %p391_p13 = pnand %p389_p12, %p386_p11 }
  0x26   :  { %394 = shalt.err (!%p391_p13)
}
  0x27   :  { %s395_s25 = scalar_lea.vmem %s25_s17, 256  ;;  %p400_p1 = scmp.lt.s32.totalorder %s25_s17, %s25_s17 }
  0x28   :  { %p396_p0 = scmp.ne.s32.totalorder %s25_s17, %s395_s25  ;;  %p401_p2 = scmp.lt.s32.totalorder %s395_s25, %s395_s25 }
  0x2a   :  { %p402_p3 = por %p401_p2, %p400_p1 }
  0x2c   :  { %p403_p4 = pnand %p402_p3, %p396_p0 }
  0x2e   :  { %406 = shalt.err (!%p403_p4)
}
  0x2f   :  { %s488_s2 = smov 128   ;;  %s489_s26 = smov 8  }
  0x30   :  { %30 = dma.hbm_to_vmem [thread:$0]  %s629_s1, 256, %s25_s17, [#allocation5], %s488_s2, %s488_s2, %s489_s26  }
  0x31   :  { %s490_s29 = smov [#allocation9]   ;;  %s407_s8 = scalar_lea.hbm %s631_s3, 1024 }
  0x32   :  { %s48_s30 = sshll.u32 %s490_s29, 4  ;;  %p408_p5 = scmp.ne.s32.totalorder %s631_s3, %s407_s8  ;;  %s49_s30 = int_to_ptr.vmem [resolvable:$true] %s48_s30 }
  0x33   :  { %p411_p6 = scmp.lt.u32.totalorder %s407_s8, %s631_s3 }
  0x35   :  { %p413_p7 = pnand %p411_p6, %p408_p5 }
  0x37   :  { %416 = shalt.err (!%p413_p7)
}
  0x38   :  { %s417_s14 = scalar_lea.vmem %s49_s30, 1024  ;;  %p422_p9 = scmp.lt.s32.totalorder %s49_s30, %s49_s30 }
  0x39   :  { %p418_p8 = scmp.ne.s32.totalorder %s49_s30, %s417_s14  ;;  %p423_p10 = scmp.lt.s32.totalorder %s417_s14, %s417_s14 }
  0x3b   :  { %p424_p11 = por %p423_p10, %p422_p9 }
  0x3d   :  { %p425_p12 = pnand %p424_p11, %p418_p8 }
  0x3f   :  { %428 = shalt.err (!%p425_p12)
}
  0x40   :  { %54 = dma.hbm_to_vmem [thread:$0]  %s631_s3, 1024, %s49_s30, [#allocation8], %s485_s12, %s485_s12, %s486_s13  }
  0x41   :  { %475 = dma.done.wait [#allocation5], 256  }
  0x42   :  { %476 = vsyncadd [#allocation5], 4294967040 }
  0x43   :  { %477 = dma.done.wait [#allocation8], 2048  }
  0x44   :  { %478 = vsyncadd [#allocation8], 4294965248  ;;  %v491_v0 = vmov 0.0   ;;  %v67_v1 = vld [vmem:[#allocation7 + $0x8] sm:$0xff]  ;;  %v66_v3 = vld [vmem:[#allocation7] sm:$0xff]  ;;  %vm74_vm0 = vcmask 130048  }
  0x45   :  { %145 = vmatprep.mubr.f32.mxu0 %v491_v0  ;;  %222 = vmatprep.mubr.f32.mxu1 %v491_v0  ;;  %v71_v2 = vld [vmem:[#allocation7 + $0x28] sm:$0xff]  ;;  %v70_v5 = vld [vmem:[#allocation7 + $0x20] sm:$0xff]  ;;  %v69_v6 = vld [vmem:[#allocation7 + $0x18] sm:$0xff]  ;;  %s243_s3 = sld [smem:[#allocation3]]  ;;  %s333_s16 = sld [smem:[#allocation3 + $0x1]] }
  0x46   :  { %v334_v4 = vpack.c.bf16 %v71_v2, %v67_v1  ;;  %v73_v7 = vld [vmem:[#allocation7 + $0x38] sm:$0xff]  ;;  %v336_v8 = vpack.c.bf16 %v70_v5, %v66_v3  ;;  %v68_v10 = vld [vmem:[#allocation7 + $0x10] sm:$0xff]  ;;  %v245_v15 = vld [vmem:[#allocation9] sm:$0xff]  ;;  %s492_s17 = smov [#allocation10]  }
  0x47   :  { %v338_v9 = vpack.c.bf16 %v73_v7, %v69_v6  ;;  %v72_v11 = vld [vmem:[#allocation7 + $0x30] sm:$0xff]  ;;  %v65_v14 = vld [vmem:[#allocation4 + $0x8] sm:$0xff]  ;;  %v246_v16 = vld [vmem:[#allocation9 + $0x8] sm:$0xff]  ;;  %s300_s18 = sshll.u32 %s492_s17, 4  ;;  %s584_s18 = int_to_ptr.vmem [resolvable:$true] %s300_s18 }
  0x48   :  { %335 = vmatprep.subr.bf16.mxu0 %v334_v4  ;;  %v340_v12 = vpack.c.bf16 %v72_v11, %v68_v10  ;;  %v64_v13 = vld [vmem:[#allocation4] sm:$0xff]  ;;  %v248_v19 = vld [vmem:[#allocation9 + $0x18] sm:$0xff]  ;;  %v249_v27 = vld [vmem:[#allocation9 + $0x20] sm:$0xff]  ;;  %s429_s19 = scalar_lea.vmem %s584_s18, 1024  ;;  %p434_p0 = scmp.lt.s32.totalorder %s584_s18, %s584_s18 }
  0x49   :  { %337 = vmatpush1.bf16.msra.mxu0 %v336_v8  ;;  %339 = vmatprep.subr.bf16.mxu1 %v338_v9  ;;  %v247_v17 = vld [vmem:[#allocation9 + $0x10] sm:$0xff]  ;;  %v250_v30 = vld [vmem:[#allocation9 + $0x28] sm:$0xff]  ;;  %v252_v36 = vld [vmem:[#allocation9 + $0x38] sm:$0xff]  ;;  %p430_p13 = scmp.ne.s32.totalorder %s584_s18, %s429_s19  ;;  %p435_p1 = scmp.lt.s32.totalorder %s429_s19, %s429_s19 }
  0x4a   :  { %341 = vmatpush1.bf16.msra.mxu1 %v340_v12  ;;  %v251_v31 = vld [vmem:[#allocation9 + $0x30] sm:$0xff] }
  0x4b   :  { %v581_v23 = vstv %s243_s3  ;;  %v278_v32 = vstv %s333_s16  ;;  %p436_p2 = por %p435_p1, %p434_p0 }
  0x4c   :  { %329 = vmatmul.mubr.msk.f32.vlgmr.msra.gmra.mrb[0].mxu0 %vm74_vm0, %v64_v13 }
  0x4d   :  { %331 = vmatmul.mubr.msk.f32.vlgmr.msra.gmra.mrb[0].mxu1 %vm74_vm0, %v64_v13  ;;  %151 = vmatprep.mubr.f32.mxu0 %v491_v0  ;;  %p437_p3 = pnand %p436_p2, %p430_p13 }
  0x4e   :  { %228 = vmatprep.mubr.f32.mxu1 %v491_v0 }
  0x50   :  { %330 = vmatmul.mubr.msk.f32.gmra.mrb[2].mxu0 %vm74_vm0, %v65_v14 }
  0x51   :  { %332 = vmatmul.mubr.msk.f32.gmra.mrb[2].mxu1 %vm74_vm0, %v65_v14 }
 0x11f   :  { %v147_v18 = vpop.f32.mrb[0].mxu0 }
 0x120   :  { %235 = vst [vmem:[#allocation10] sm:$0xff] %v147_v18  ;;  %v253_v20 = vsub.f32 %v245_v15, %v147_v18  ;;  %v149_v21 = vpop.f32.mrb[1].mxu0  ;;  %v224_v22 = vpop.f32.mrb[0].mxu1 }
 0x121   :  { %236 = vst [vmem:[#allocation10 + $0x8] sm:$0xff] %v149_v21  ;;  %v254_v24 = vsub.f32 %v246_v16, %v149_v21  ;;  %237 = vst [vmem:[#allocation10 + $0x10] sm:$0xff] %v224_v22  ;;  %v255_v25 = vsub.f32 %v247_v17, %v224_v22  ;;  %v226_v26 = vpop.f32.mrb[1].mxu1 }
 0x122   :  { %v261_v28 = vmul.f32 %v253_v20, %v253_v20  ;;  %238 = vst [vmem:[#allocation10 + $0x18] sm:$0xff] %v226_v26  ;;  %v256_v29 = vsub.f32 %v248_v19, %v226_v26 }
 0x123   :  { %v262_v33 = vmul.f32 %v254_v24, %v254_v24  ;;  %v263_v34 = vmul.f32 %v255_v25, %v255_v25  ;;  %v153_v35 = vpop.f32.mrb[2].mxu0 }
 0x124   :  { %v270_v37 = vmul.f32 %v581_v23, %v261_v28  ;;  %v264_v38 = vmul.f32 %v256_v29, %v256_v29  ;;  %239 = vst [vmem:[#allocation10 + $0x20] sm:$0xff] %v153_v35  ;;  %v257_v39 = vsub.f32 %v249_v27, %v153_v35  ;;  %v155_v40 = vpop.f32.mrb[3].mxu0  ;;  %v230_v41 = vpop.f32.mrb[2].mxu1 }
 0x125   :  { %v271_v42 = vmul.f32 %v581_v23, %v262_v33  ;;  %v272_v43 = vmul.f32 %v581_v23, %v263_v34  ;;  %240 = vst [vmem:[#allocation10 + $0x28] sm:$0xff] %v155_v40  ;;  %v258_v44 = vsub.f32 %v250_v30, %v155_v40  ;;  %241 = vst [vmem:[#allocation10 + $0x30] sm:$0xff] %v230_v41  ;;  %v232_v46 = vpop.f32.mrb[3].mxu1 }
 0x126   :  { %v259_v45 = vsub.f32 %v251_v31, %v230_v41  ;;  %v279_v47 = vsub.f32 %v278_v32, %v270_v37  ;;  %v273_v48 = vmul.f32 %v581_v23, %v264_v38  ;;  %v265_v49 = vmul.f32 %v257_v39, %v257_v39  ;;  %242 = vst [vmem:[#allocation10 + $0x38] sm:$0xff] %v232_v46 }
 0x127   :  { %v260_v50 = vsub.f32 %v252_v36, %v232_v46  ;;  %v280_v51 = vsub.f32 %v278_v32, %v271_v42  ;;  %v281_v52 = vsub.f32 %v278_v32, %v272_v43  ;;  %v266_v53 = vmul.f32 %v258_v44, %v258_v44 }
 0x128   :  { %v267_v54 = vmul.f32 %v259_v45, %v259_v45 }
 0x129   :  { %440 = shalt.err (!%p437_p3)
}
 0x12a   :  { %s441_s22 = scalar_lea.hbm %s632_s4, 1024 }
 0x12b   :  { %p442_p4 = scmp.ne.s32.totalorder %s632_s4, %s441_s22  ;;  %p445_p5 = scmp.lt.u32.totalorder %s441_s22, %s632_s4 }
 0x12d   :  { %p447_p6 = pnand %p445_p5, %p442_p4 }
 0x12f   :  { %450 = shalt.err (!%p447_p6)
}
 0x130   :  { %306 = dma.vmem_to_hbm [thread:$0]  %s584_s18, 1024, %s632_s4, [#allocation6], %s485_s12, %s485_s12, %s486_s13   ;;  %v274_v55 = vmul.f32 %v581_v23, %v265_v49  ;;  %v268_v56 = vmul.f32 %v260_v50, %v260_v50  ;;  %v287_v57 = vadd.f32 %v280_v51, %v279_v47  ;;  %v275_v58 = vmul.f32 %v581_v23, %v266_v53 }
 0x131   :  { %v276_v59 = vmul.f32 %v581_v23, %v267_v54  ;;  %v282_v60 = vsub.f32 %v278_v32, %v273_v48  ;;  %s493_s30 = smov [#allocation11]  }
 0x132   :  { %v283_v61 = vsub.f32 %v278_v32, %v274_v55  ;;  %v284_v62 = vsub.f32 %v278_v32, %v275_v58  ;;  %v277_v0 = vmul.f32 %v581_v23, %v268_v56  ;;  %v289_v1 = vadd.f32 %v287_v57, %v281_v52  ;;  %s312_s6 = sshll.u32 %s493_s30, 4  ;;  %s313_s6 = int_to_ptr.vmem [resolvable:$true] %s312_s6 }
 0x133   :  { %v285_v63 = vsub.f32 %v278_v32, %v276_v59  ;;  %s451_s4 = scalar_lea.vmem %s313_s6, 256  ;;  %p456_p8 = scmp.lt.s32.totalorder %s313_s6, %s313_s6 }
 0x134   :  { %v288_v2 = vadd.f32 %v284_v62, %v283_v61  ;;  %v291_v3 = vadd.f32 %v289_v1, %v282_v60  ;;  %v286_v4 = vsub.f32 %v278_v32, %v277_v0  ;;  %p452_p7 = scmp.ne.s32.totalorder %s313_s6, %s451_s4  ;;  %p457_p9 = scmp.lt.s32.totalorder %s451_s4, %s451_s4 }
 0x136   :  { %v290_v5 = vadd.f32 %v288_v2, %v285_v63  ;;  %293 = vst [vmem:[#allocation11] sm:$0xff] %v291_v3  ;;  %p458_p10 = por %p457_p9, %p456_p8 }
 0x138   :  { %v292_v6 = vadd.f32 %v290_v5, %v286_v4  ;;  %p459_p11 = pnand %p458_p10, %p452_p7 }
 0x13a   :  { %294 = vst [vmem:[#allocation11 + $0x8] sm:$0xff] %v292_v6 }
 0x13b   :  { %462 = shalt.err (!%p459_p11)
}
 0x13c   :  { %s463_s7 = scalar_lea.hbm %s633_s5, 256 }
 0x13d   :  { %p464_p12 = scmp.ne.s32.totalorder %s633_s5, %s463_s7  ;;  %p467_p13 = scmp.lt.u32.totalorder %s463_s7, %s633_s5 }
 0x13f   :  { %p469_p0 = pnand %p467_p13, %p464_p12 }
 0x141   :  { %472 = shalt.err (!%p469_p0)
}
 0x142   :  { %318 = dma.vmem_to_hbm [thread:$0]  %s313_s6, 256, %s633_s5, [#allocation12], %s488_s2, %s488_s2, %s489_s26  }
 0x143   :  { %479 = dma.done.wait [#allocation6], 1024  }
 0x144   :  { %480 = vsyncadd [#allocation6], 4294966272 }
 0x145   :  { %481 = dma.done.wait [#allocation12], 256  }
 0x146   :  { %482 = vsyncadd [#allocation12], 4294967040 }
 0x147   :  { %325 = vsyncpa [#allocation5], 1 }
 0x148   :  { %326 = vsyncpa [#allocation8], 1 }
 0x149   :  { %327 = vsyncpa [#allocation6], 1 }
 0x14a   :  { %328 = vsyncpa [#allocation12], 1 }

</bundles_post_ra>
